<compile_context>
chip_gen: v6e
topology: v6e:2x2x1
jax: 0.10.0
libtpu: 0.0.40
codegen_flags: <defaults>
</compile_context>

<pallas_src>
import functools
import math

import jax
import jax.numpy as jnp
from jax import lax
from jax.experimental import pallas as pl
from jax.experimental.pallas import tpu as pltpu


def _round_up(x, m):
    return -(-x // m) * m


def _ceil_div(a, b):
    return -(-a // b)


# ----------------------------- kernels ---------------------------------------

def _tile_pe_rows(pe_tile, batch):
    """(ts, D) pe rows -> (ts, batch*D), matching the x.reshape(S, B*D) layout.

    Built from O(log2(batch)) lane-dim concats (cheap, in-register); this avoids
    materializing a broadcast pe in HBM (which would add a full S*B*D stream to
    a purely HBM-bound kernel).
    """
    if batch == 1:
        return pe_tile
    pieces = []
    remaining = batch
    cur = pe_tile
    while remaining > 0:
        if remaining & 1:
            pieces.append(cur)
        remaining >>= 1
        if remaining:
            cur = jnp.concatenate([cur, cur], axis=-1)
    out = pieces[0]
    for p in pieces[1:]:
        out = jnp.concatenate([out, p], axis=-1)
    return out


def _pe_add_kernel(x_ref, pe_ref, o_ref, *, batch):
    # x_ref : (ts, B*D) chunk of sequence rows (flattened over batch/dim)
    # pe_ref: (ts, D)   positional-encoding rows
    pe_b = _tile_pe_rows(pe_ref[...], batch)
    o_ref[...] = (x_ref[...] + pe_b).astype(o_ref.dtype)


def _hash_u32(x):
    # lowbias32 integer finalizer: good avalanche on sequential counters.
    # Pure VPU integer ops (xor / logical shift / wrapping mul) — lowers on
    # Mosaic and on the interpret/CPU fallback alike.
    x = x ^ (x >> 16)
    x = x * jnp.uint32(0x7FEB352D)
    x = x ^ (x >> 15)
    x = x * jnp.uint32(0x846CA68B)
    x = x ^ (x >> 16)
    return x


def _pe_add_dropout_kernel(seed_ref, x_ref, pe_ref, o_ref, *, batch,
                           keep_threshold, inv_keep):
    ts, L = x_ref.shape
    pe_b = _tile_pe_rows(pe_ref[...], batch)
    val = x_ref[...] + pe_b

    # Stateless counter-based PRNG over the *global* element index, so the
    # realized dropout mask does not depend on the tile size / chip generation.
    row0 = pl.program_id(0) * ts
    rows = lax.broadcasted_iota(jnp.int32, (ts, L), 0) + row0
    cols = lax.broadcasted_iota(jnp.int32, (ts, L), 1)
    idx = (rows * jnp.int32(L) + cols).astype(jnp.uint32)
    seed_mix = seed_ref[0].astype(jnp.uint32) * jnp.uint32(0x9E3779B9)
    h = _hash_u32(idx ^ seed_mix)

    # 31 uniform bits -> signed compare (both operands non-negative).
    r = (h >> 1).astype(jnp.int32)
    keep = r < jnp.int32(keep_threshold)

    # Inverted dropout; scale in f32 (exact 1/(1-p)), cast once at the store.
    scaled = val.astype(jnp.float32) * jnp.float32(inv_keep)
    o_ref[...] = jnp.where(keep, scaled, jnp.float32(0.0)).astype(o_ref.dtype)


# ------------------------ parameter (buffer) setup ---------------------------

def make_positional_encoding(dim_model: int, max_seq_len: int = 60,
                             dtype=jnp.float32):
    """Deterministically build the `pe` buffer exactly like the torch __init__.

    Built once in the activation dtype (feedback: avoids a per-forward
    slice+convert pass over pe).
    """
    position = jnp.arange(max_seq_len, dtype=jnp.float32)[:, None]          # (S, 1)
    div_term = jnp.exp(
        jnp.arange(0, dim_model, 2, dtype=jnp.float32)
        * (-math.log(10000.0) / dim_model)
    )                                                                        # (D/2,)
    pe = jnp.zeros((max_seq_len, dim_model), jnp.float32)
    pe = pe.at[:, 0::2].set(jnp.sin(position * div_term))
    pe = pe.at[:, 1::2].set(jnp.cos(position * div_term))
    return pe[:, None, :].astype(dtype)   # (max_seq_len, 1, dim_model)


# ------------------------------ wrapper --------------------------------------

def _num_tensorcores():
    """TensorCores per chip that share this kernel's grid (megacore)."""
    try:
        kind = jax.devices()[0].device_kind.lower()
    except Exception:
        return 1
    # v4 / v5p / v7x have 2 TensorCores per chip; v5e / v6e (and CPU) have 1.
    if ("v5p" in kind) or ("v4" in kind) or ("7x" in kind) or ("v7" in kind):
        return 2
    return 1


def _pick_seq_tile(S, row_elems, itemsize, num_cores, target_bytes=4 << 20):
    """Seq-tile so one x/out buffer is ~4 MiB of padded VMEM.

    This op is pure HBM bandwidth; big tiles amortize the ~0.35 us per-grid-step
    overhead to <5%.  The megacore split is applied only on 2-TC chips and keeps
    >= 2 steps per core so the BlockSpec pipeline still has an i+1 to prefetch.
    """
    padded_row_bytes = _round_up(row_elems, 128) * itemsize
    ts = max(1, target_bytes // padded_row_bytes)
    if num_cores > 1:
        ts = min(ts, max(1, _ceil_div(S, 2 * num_cores)))
    if ts >= S:
        return S
    return max(8, (ts // 8) * 8)          # (8,128) sublane alignment


def _vmem_limit_bytes(ts, row_elems, d, itemsize):
    """Double-buffered x + out tiles + pe tiles, with headroom."""
    rows = _round_up(ts, 8)
    x_tile = rows * _round_up(row_elems, 128) * itemsize
    pe_tile = rows * _round_up(d, 128) * itemsize
    need = 2 * (2 * x_tile) + 2 * pe_tile
    need = need + need // 4 + (2 << 20)
    # Floor at the default scoped limit, cap at v7x's 64 MiB physical VMEM.
    return int(min(max(need, 32 << 20), 64 << 20))


def positional_encoding_forward(x, pe, *, dropout_p=0.1, training=False, seed=0):
    """x: (seq_len, batch, dim_model); pe: (max_seq_len, 1, dim_model)."""
    S, B, D = x.shape
    assert pe.shape[0] >= S and pe.shape[-1] == D
    L = B * D
    assert S * L < 2**31, "dropout index space must fit in int32"
    # TODO(synk): for extremely wide rows (B*D*itemsize >> 4 MiB) add a second
    # grid axis over the flattened batch*dim axis; only the seq axis is tiled here.

    # Lane/sublane-dense presentation: contiguous (free) view of x/out as
    # (S, B*D) so block minor dims are (seq_rows, B*D) rather than (B, D).
    x2 = x.reshape(S, L)
    pe2 = pe[:S, 0, :]                      # (S, D)
    if pe2.dtype != x.dtype:
        pe2 = pe2.astype(x.dtype)           # fallback; prefer building pe in x.dtype

    itemsize = jnp.dtype(x.dtype).itemsize
    num_cores = _num_tensorcores()
    ts = _pick_seq_tile(S, L, itemsize, num_cores)
    grid = (_ceil_div(S, ts),)

    params = pltpu.CompilerParams(
        dimension_semantics=("parallel",),
        vmem_limit_bytes=_vmem_limit_bytes(ts, L, D, itemsize),
    )
    cost = pl.CostEstimate(
        flops=S * L,
        transcendentals=0,
        bytes_accessed=(2 * S * L + S * D) * itemsize,
    )
    out_shape = jax.ShapeDtypeStruct((S, L), x.dtype)

    if (not training) or dropout_p <= 0.0:
        # NOTE(feedback): in a full model, prefer returning `x + pe[:S]` in plain
        # JAX for this path so XLA can fuse the add into producers/consumers; the
        # Pallas path is kept here so the kernel itself is exercised stand-alone.
        out2 = pl.pallas_call(
            functools.partial(_pe_add_kernel, batch=B),
            out_shape=out_shape,
            grid=grid,
            in_specs=[
                pl.BlockSpec((ts, L), lambda i: (i, 0)),   # x chunk
                pl.BlockSpec((ts, D), lambda i: (i, 0)),   # pe chunk
            ],
            out_specs=pl.BlockSpec((ts, L), lambda i: (i, 0)),
            compiler_params=params,
            cost_estimate=cost,
        )(x2, pe2)
        return out2.reshape(S, B, D)

    p = float(dropout_p)
    inv_keep = 0.0 if p >= 1.0 else 1.0 / (1.0 - p)
    keep_threshold = min(int(round((1.0 - p) * 2147483648.0)), 2147483647)
    kernel = functools.partial(
        _pe_add_dropout_kernel, batch=B,
        keep_threshold=keep_threshold, inv_keep=inv_keep)
    seed_arr = jnp.asarray([seed], dtype=jnp.int32)

    out2 = pl.pallas_call(
        kernel,
        out_shape=out_shape,
        grid_spec=pltpu.PrefetchScalarGridSpec(
            num_scalar_prefetch=1,                       # dropout seed in SMEM
            grid=grid,
            in_specs=[
                pl.BlockSpec((ts, L), lambda i, seed_ref: (i, 0)),   # x chunk
                pl.BlockSpec((ts, D), lambda i, seed_ref: (i, 0)),   # pe chunk
            ],
            out_specs=pl.BlockSpec((ts, L), lambda i, seed_ref: (i, 0)),
        ),
        compiler_params=params,
        cost_estimate=cost,
    )(seed_arr, x2, pe2)
    return out2.reshape(S, B, D)


# -------------------------------- main ---------------------------------------

if __name__ == "__main__":
    SEQ, BATCH, DIM = 8, 2, 32
    MAX_SEQ_LEN = 60

    key = jax.random.PRNGKey(0)
    x = jax.random.normal(key, (SEQ, BATCH, DIM), dtype=jnp.float32)

    pe = make_positional_encoding(DIM, MAX_SEQ_LEN, dtype=x.dtype)
    ref = x + pe[:SEQ]

    # Eval-mode forward (dropout is identity), matching module.eval() behavior.
    out_eval = jax.block_until_ready(
        positional_encoding_forward(x, pe, dropout_p=0.1, training=False))
    assert out_eval.shape == (SEQ, BATCH, DIM)
    assert jnp.allclose(out_eval, ref, atol=1e-6), "eval-mode mismatch vs reference"

    # Training-mode forward: in-kernel dropout with the counter-based hash PRNG.
    # Torch's RNG stream is not bit-reproducible, so check the dropout property:
    # every element is either 0 (dropped) or (x+pe)/(1-p) (kept & rescaled).
    p = 0.1
    out_trn = jax.block_until_ready(
        positional_encoding_forward(x, pe, dropout_p=p, training=True, seed=1234))
    kept_val = ref / (1.0 - p)
    err = jnp.minimum(jnp.abs(out_trn), jnp.abs(out_trn - kept_val))
    assert float(jnp.max(err)) < 1e-4, "training output not a valid dropout of x+pe"
    drop_frac = float(jnp.mean((out_trn == 0.0).astype(jnp.float32)))
    assert drop_frac < 0.5, "dropout rate far from p (hash bias?)"

    print("KERNEL_OK")
</pallas_src>

<mosaic_0001>
module attributes {stable_mosaic.version = 11 : i64} {
  func.func @_pe_add_kernel(%arg0: i32, %arg1: memref<8x64xf32, #tpu.memory_space<vmem>>, %arg2: memref<8x32xf32, #tpu.memory_space<vmem>>, %arg3: memref<8x64xf32, #tpu.memory_space<vmem>>) attributes {dimension_semantics = [#tpu.dimension_semantics<parallel>], iteration_bounds = array<i64: 1>, scalar_prefetch = 0 : i64, scratch_operands = 0 : i64, tpu.core_type = #tpu.core_type<tc>, window_params = [{transform_indices = @transform_0, window_bounds = array<i64: 8, 64>}, {transform_indices = @transform_1, window_bounds = array<i64: 8, 32>}, {transform_indices = @transform_2, window_bounds = array<i64: 8, 64>}]} {
    %c0 = arith.constant 0 : index
    %c0_0 = arith.constant 0 : index
    %0 = vector.load %arg2[%c0, %c0_0] : memref<8x32xf32, #tpu.memory_space<vmem>>, vector<8x32xf32>
    %1 = tpu.concatenate %0, %0 in 1 : vector<8x32xf32>, vector<8x32xf32> -> vector<8x64xf32>
    %c0_1 = arith.constant 0 : index
    %c0_2 = arith.constant 0 : index
    %2 = vector.load %arg1[%c0_1, %c0_2] : memref<8x64xf32, #tpu.memory_space<vmem>>, vector<8x64xf32>
    %3 = arith.addf %2, %1 : vector<8x64xf32>
    %c0_3 = arith.constant 0 : index
    %c0_4 = arith.constant 0 : index
    %4 = vector.load %arg3[%c0_3, %c0_4] : memref<8x64xf32, #tpu.memory_space<vmem>>, vector<8x64xf32>
    tpu.vector_store %arg3[%c0_3, %c0_4], %3 {strides = array<i32>} : memref<8x64xf32, #tpu.memory_space<vmem>>, vector<8x64xf32>,
    return
  }
  func.func @transform_0(%arg0: i32) -> (i32, i32) {
    %c0_i32 = arith.constant 0 : i32
    %c0_i32_0 = arith.constant 0 : i32
    return %arg0, %c0_i32 : i32, i32
  }
  func.func @transform_1(%arg0: i32) -> (i32, i32) {
    %c0_i32 = arith.constant 0 : i32
    %c0_i32_0 = arith.constant 0 : i32
    return %arg0, %c0_i32 : i32, i32
  }
  func.func @transform_2(%arg0: i32) -> (i32, i32) {
    %c0_i32 = arith.constant 0 : i32
    %c0_i32_0 = arith.constant 0 : i32
    return %arg0, %c0_i32 : i32, i32
  }
}

</mosaic_0001>

<bundles_post_ra>
// kernel: tpu_custom_call.1
= control target key start
LH: loop header
LB: loop body
LE: loop exit
PB: predicated region body
PF: predicated region fallthrough
CT: control target
= control target key end

     0   :  { %7 = vsyncpa [#allocation3], 0  ;;  %s161_s0 = inlined_call_operand.hbm [shape: f32[8,64], index: 0, kind: input, shape index: {}]   ;;  %s162_s1 = inlined_call_operand.hbm [shape: f32[8,32], index: 1, kind: input, shape index: {}]   ;;  %s163_s2 = inlined_call_operand.hbm [shape: f32[8,64], index: 2, kind: output, shape index: {}]  }
   0x1   :  { %8 = vsyncpa [#allocation6], 0 }
   0x2   :  { %9 = vsyncpa [#allocation4], 0  ;;  %s133_s9 = smov [#allocation2]   ;;  %s134_s11 = smov [#allocation5]  }
   0x3   :  { %s16_s10 = sshll.u32 %s133_s9, 4  ;;  %s26_s12 = sshll.u32 %s134_s11, 4  ;;  %s17_s10 = int_to_ptr.vmem [resolvable:$true] %s16_s10  ;;  %s27_s12 = int_to_ptr.vmem [resolvable:$true] %s26_s12 }
   0x4   :  { %s75_s13 = scalar_lea.vmem %s17_s10, 128  ;;  %p80_p1 = scmp.lt.s32.totalorder %s17_s10, %s17_s10 }
   0x5   :  { %p76_p0 = scmp.ne.s32.totalorder %s17_s10, %s75_s13  ;;  %p81_p2 = scmp.lt.s32.totalorder %s75_s13, %s75_s13 }
   0x7   :  { %p82_p3 = por %p81_p2, %p80_p1 }
   0x9   :  { %p83_p4 = pnand %p82_p3, %p76_p0 }
   0xb   :  { %86 = shalt.err (!%p83_p4)
}
   0xc   :  { %19 = dma.hbm_to_vmem [thread:$0]  %s161_s0, 128, %s17_s10, [#allocation3]  }
   0xd   :  { %s95_s16 = scalar_lea.vmem %s27_s12, 128  ;;  %p100_p6 = scmp.lt.s32.totalorder %s27_s12, %s27_s12 }
   0xe   :  { %p96_p5 = scmp.ne.s32.totalorder %s27_s12, %s95_s16  ;;  %p101_p7 = scmp.lt.s32.totalorder %s95_s16, %s95_s16 }
  0x10   :  { %p102_p8 = por %p101_p7, %p100_p6 }
  0x12   :  { %p103_p9 = pnand %p102_p8, %p96_p5 }
  0x14   :  { %106 = shalt.err (!%p103_p9)
}
  0x15   :  { %29 = dma.hbm_to_vmem [thread:$0]  %s162_s1, 128, %s27_s12, [#allocation6]  }
  0x16   :  { %127 = dma.done.wait [#allocation3], 128  }
  0x17   :  { %128 = vsyncadd [#allocation3], 4294967168 }
  0x18   :  { %129 = dma.done.wait [#allocation6], 128  }
  0x19   :  { %130 = vsyncadd [#allocation6], 4294967168  ;;  %v36_v0 = vld [vmem:[#allocation5] sm:$0xff]  ;;  %s135_s19 = smov 32   ;;  %vm41_vm0 = vcmask 261120   ;;  %v43_v1 = vld [vmem:[#allocation2] sm:$0xff] }
  0x1a   :  { %38 = vrot.lane.b32.xlu0 %v36_v0, %s135_s19  ;;  %s136_s0 = smov [#allocation7]   ;;  %vm45_vm1 = vcmask 523264  }
  0x1b   :  { %s53_s20 = sshll.u32 %s136_s0, 4  ;;  %s54_s20 = int_to_ptr.vmem [resolvable:$true] %s53_s20 }
  0x1c   :  { %s107_s21 = scalar_lea.vmem %s54_s20, 128  ;;  %p112_p11 = scmp.lt.s32.totalorder %s54_s20, %s54_s20 }
  0x1d   :  { %p108_p10 = scmp.ne.s32.totalorder %s54_s20, %s107_s21  ;;  %p113_p12 = scmp.lt.s32.totalorder %s107_s21, %s107_s21 }
  0x1f   :  { %p114_p13 = por %p113_p12, %p112_p11 }
  0x21   :  { %p115_p0 = pnand %p114_p13, %p108_p10 }
  0x8c   :  { %v39_v2 = vpop.permute.xlu0 %38 }
  0x8d   :  { %v42_v3 = vsel %vm41_vm0, %v36_v0, %v39_v2 }
  0x8e   :  { %v44_v4 = vadd.f32 %v43_v1, %v42_v3 }
  0x90   :  { %46 = vst.msk [vmem:[#allocation7] sm:$0xff] %vm45_vm1, %v44_v4 }
  0x91   :  { %118 = shalt.err (!%p115_p0)
}
  0x92   :  { %56 = dma.vmem_to_hbm [thread:$0]  %s54_s20, 128, %s163_s2, [#allocation4]  }
  0x93   :  { %131 = dma.done.wait [#allocation4], 128  }
  0x94   :  { %132 = vsyncadd [#allocation4], 4294967168 }
  0x95   :  { %60 = vsyncpa [#allocation3], 1 }
  0x96   :  { %61 = vsyncpa [#allocation6], 1 }
  0x97   :  { %62 = vsyncpa [#allocation4], 1 }

</bundles_post_ra>
